<compile_context>
chip_gen: v7x
topology: tpu7x:2x2x1
jax: 0.10.0
libtpu: 0.0.40
codegen_flags: <defaults>
</compile_context>

<pallas_src>
import functools

import jax
import jax.numpy as jnp
from jax.experimental import pallas as pl
from jax.experimental.pallas import tpu as pltpu

STATE_DIM = 16      # stand-in for C.state_dim (synthetic)
HIDDEN = 256
MAX_ACTION = 2.0


def _round_up(x, m):
    return ((x + m - 1) // m) * m


def _actor_kernel(x_ref, w1_ref, b1_ref, w2_ref, b2_ref, w3_ref, b3_ref,
                  w4_ref, b4_ref, o_ref, *, max_action):
    # MXU matmuls take bf16 operands with f32 accumulation; all elementwise
    # math (bias add, relu, tanh) stays f32.
    x = x_ref[...].astype(jnp.bfloat16)

    h = jnp.dot(x, w1_ref[...], preferred_element_type=jnp.float32) + b1_ref[...]
    h = jnp.maximum(h, 0.0)

    h = jnp.dot(h.astype(jnp.bfloat16), w2_ref[...],
                preferred_element_type=jnp.float32) + b2_ref[...]
    h = jnp.maximum(h, 0.0)

    h = jnp.dot(h.astype(jnp.bfloat16), w3_ref[...],
                preferred_element_type=jnp.float32) + b3_ref[...]
    h = jnp.maximum(h, 0.0)

    # l4: single output unit. Contract h's feature axis against the one weight
    # row (both contracting dims are the last dims, the standard q.k^T MXU
    # pattern). Result is already a lane-dense (1, TILE_B) row, so tanh runs on
    # TILE_B elements (not TILE_B*128) and the store is unmasked for TILE_B a
    # multiple of 128.
    a = jnp.einsum("od,bd->ob", w4_ref[...], h.astype(jnp.bfloat16),
                   preferred_element_type=jnp.float32)          # (1, TILE_B)
    o_ref[...] = max_action * jnp.tanh(a + b4_ref[0])


def actor_forward(state, params, max_action=MAX_ACTION, tile_b=512):
    """state: (B, STATE_DIM) f32.  `params` from prep_params.  Returns (B, 1) f32."""
    w1, b1, w2, b2, w3, b3, w4, b4 = params
    B, S = state.shape

    # Batch tile: sublane-aligned, large by default (512) to amortize per-step
    # pipeline overhead and fill the 256-wide MXU M dimension.
    TILE_B = min(tile_b, _round_up(B, 8))
    # v7x megacore: the batch grid axis is "parallel" and shards across the two
    # TensorCores; if the batch would land in a single big tile, split it so
    # both cores get work (keeps the tile >=128 rows, still MXU-friendly).
    if TILE_B >= 256 and pl.cdiv(B, TILE_B) % 2 == 1:
        TILE_B = _round_up(TILE_B // 2, 8)
    n_tiles = pl.cdiv(B, TILE_B)
    B_pad = n_tiles * TILE_B
    if B_pad != B:
        state = jnp.pad(state, ((0, B_pad - B), (0, 0)))

    weight_bytes = sum(int(a.size) * a.dtype.itemsize
                       for a in (w1, b1, w2, b2, w3, b3, w4, b4))
    cost = pl.CostEstimate(
        flops=2 * B_pad * (S * HIDDEN + 2 * HIDDEN * HIDDEN + HIDDEN),
        transcendentals=B_pad,                                  # one tanh per row
        bytes_accessed=weight_bytes + B_pad * S * 4 + B_pad * 4,
    )

    # Weights/biases: constant index map -> VMEM-resident for the whole grid;
    # single-buffered (no point double-buffering blocks that never change).
    def wspec(shape):
        return pl.BlockSpec(shape, lambda i: (0, 0), pipeline_mode=pl.Buffered(1))

    out = pl.pallas_call(
        functools.partial(_actor_kernel, max_action=float(max_action)),
        out_shape=jax.ShapeDtypeStruct((n_tiles, 1, TILE_B), jnp.float32),
        grid=(n_tiles,),
        in_specs=[
            pl.BlockSpec((TILE_B, S), lambda i: (i, 0)),
            wspec((S, HIDDEN)), wspec((1, HIDDEN)),
            wspec((HIDDEN, HIDDEN)), wspec((1, HIDDEN)),
            wspec((HIDDEN, HIDDEN)), wspec((1, HIDDEN)),
            wspec((1, HIDDEN)),                                   # w4 row (bf16)
            pl.BlockSpec(memory_space=pltpu.MemorySpace.SMEM),    # b4 scalar
        ],
        # Lane-dense output: one (1, TILE_B) f32 row per grid step.
        out_specs=pl.BlockSpec((None, 1, TILE_B), lambda i: (i, 0, 0)),
        compiler_params=pltpu.CompilerParams(
            dimension_semantics=("parallel",),     # megacore sharding on v7x
        ),
        cost_estimate=cost,
    )(state, w1, b1, w2, b2, w3, b3, w4, b4)

    # (n_tiles, 1, TILE_B) rows are in batch order -> trivial reshape + slice.
    return out.reshape(-1)[:B].reshape(B, 1)


def init_params(key):
    """Deterministic f32 init matching nn.Linear shapes (weights stored transposed)."""
    def linear(key, fan_in, fan_out):
        kw, kb = jax.random.split(key)
        bound = 1.0 / jnp.sqrt(fan_in)
        w = jax.random.uniform(kw, (fan_in, fan_out), jnp.float32, -bound, bound)
        b = jax.random.uniform(kb, (fan_out,), jnp.float32, -bound, bound)
        return w, b

    k1, k2, k3, k4 = jax.random.split(key, 4)
    w1, b1 = linear(k1, STATE_DIM, HIDDEN)
    w2, b2 = linear(k2, HIDDEN, HIDDEN)
    w3, b3 = linear(k3, HIDDEN, HIDDEN)
    w4, b4 = linear(k4, HIDDEN, 1)
    return (w1, b1, w2, b2, w3, b3, w4, b4)


def prep_params(raw_params):
    """One-time param prep: bf16 weights for the MXU, f32 bias rows, w4 as a
    single (1, HIDDEN) row and b4 as an SMEM scalar (no 128-lane padding)."""
    w1, b1, w2, b2, w3, b3, w4, b4 = raw_params
    return (
        w1.astype(jnp.bfloat16), b1.reshape(1, -1).astype(jnp.float32),
        w2.astype(jnp.bfloat16), b2.reshape(1, -1).astype(jnp.float32),
        w3.astype(jnp.bfloat16), b3.reshape(1, -1).astype(jnp.float32),
        w4.reshape(1, -1).astype(jnp.bfloat16),        # (1, HIDDEN)
        b4.reshape(-1).astype(jnp.float32),            # (1,) scalar -> SMEM
    )


def actor_ref(state, raw_params, max_action=MAX_ACTION):
    """Pure-JAX f32 reference matching the PyTorch forward."""
    w1, b1, w2, b2, w3, b3, w4, b4 = raw_params
    a = jnp.maximum(state @ w1 + b1, 0.0)
    a = jnp.maximum(a @ w2 + b2, 0.0)
    a = jnp.maximum(a @ w3 + b3, 0.0)
    return max_action * jnp.tanh(a @ w4 + b4)


if __name__ == "__main__":
    key = jax.random.PRNGKey(0)
    k_param, k_state = jax.random.split(key)

    raw_params = init_params(k_param)
    params = prep_params(raw_params)          # one-time prep (bf16 cast, shapes)

    B = 8
    state = jax.random.normal(k_state, (B, STATE_DIM), jnp.float32)

    action = actor_forward(state, params)
    jax.block_until_ready(action)

    expected = actor_ref(state, raw_params)
    assert action.shape == (B, 1), action.shape
    # bf16 weights on the MXU => ~1e-2 relative error vs the f32 reference.
    max_err = jnp.max(jnp.abs(action - expected))
    assert max_err < 5e-2, max_err

    print("KERNEL_OK")
</pallas_src>

<mosaic_0001>
module attributes {stable_mosaic.version = 11 : i64} {
  func.func @_actor_kernel(%arg0: i32, %arg1: memref<8x16xf32, #tpu.memory_space<vmem>>, %arg2: memref<16x256xbf16, #tpu.memory_space<vmem>>, %arg3: memref<1x256xf32, #tpu.memory_space<vmem>>, %arg4: memref<256x256xbf16, #tpu.memory_space<vmem>>, %arg5: memref<1x256xf32, #tpu.memory_space<vmem>>, %arg6: memref<256x256xbf16, #tpu.memory_space<vmem>>, %arg7: memref<1x256xf32, #tpu.memory_space<vmem>>, %arg8: memref<1x256xbf16, #tpu.memory_space<vmem>>, %arg9: memref<1xf32, #tpu.memory_space<smem>>, %arg10: memref<1x1x8xf32, #tpu.memory_space<vmem>>) attributes {dimension_semantics = [#tpu.dimension_semantics<parallel>], iteration_bounds = array<i64: 1>, scalar_prefetch = 0 : i64, scratch_operands = 0 : i64, tpu.core_type = #tpu.core_type<tc>, window_params = [{transform_indices = @transform_0, window_bounds = array<i64: 8, 16>}, {pipeline_mode = #tpu.pipeline_mode<synchronous>, transform_indices = @transform_1, window_bounds = array<i64: 16, 256>}, {pipeline_mode = #tpu.pipeline_mode<synchronous>, transform_indices = @transform_2, window_bounds = array<i64: 1, 256>}, {pipeline_mode = #tpu.pipeline_mode<synchronous>, transform_indices = @transform_3, window_bounds = array<i64: 256, 256>}, {pipeline_mode = #tpu.pipeline_mode<synchronous>, transform_indices = @transform_4, window_bounds = array<i64: 1, 256>}, {pipeline_mode = #tpu.pipeline_mode<synchronous>, transform_indices = @transform_5, window_bounds = array<i64: 256, 256>}, {pipeline_mode = #tpu.pipeline_mode<synchronous>, transform_indices = @transform_6, window_bounds = array<i64: 1, 256>}, {pipeline_mode = #tpu.pipeline_mode<synchronous>, transform_indices = @transform_7, window_bounds = array<i64: 1, 256>}, {transform_indices = @transform_8, window_bounds = array<i64: 1>}, {transform_indices = @transform_9, window_bounds = array<i64: 1, 1, 8>}]} {
    %c0 = arith.constant 0 : index
    %c0_0 = arith.constant 0 : index
    %0 = vector.load %arg1[%c0, %c0_0] : memref<8x16xf32, #tpu.memory_space<vmem>>, vector<8x16xf32>
    %1 = arith.truncf %0 : vector<8x16xf32> to vector<8x16xbf16>
    %c0_1 = arith.constant 0 : index
    %c0_2 = arith.constant 0 : index
    %2 = vector.load %arg2[%c0_1, %c0_2] : memref<16x256xbf16, #tpu.memory_space<vmem>>, vector<16x256xbf16>
    %cst = arith.constant dense<0.000000e+00> : vector<8x256xf32>
    %3 = tpu.matmul %1, %2, %cst {dimension_numbers = #tpu.dot_dimension_numbers<[1], [0], [0], [1], [0, 0, 1, 1], [], []>} : vector<8x16xbf16>, vector<16x256xbf16>, vector<8x256xf32> -> vector<8x256xf32>
    %c0_3 = arith.constant 0 : index
    %c0_4 = arith.constant 0 : index
    %4 = vector.load %arg3[%c0_3, %c0_4] : memref<1x256xf32, #tpu.memory_space<vmem>>, vector<1x256xf32>
    %5 = vector.broadcast %4 : vector<1x256xf32> to vector<8x256xf32>
    %6 = arith.addf %3, %5 : vector<8x256xf32>
    %cst_5 = arith.constant 0.000000e+00 : f32
    %7 = vector.broadcast %cst_5 : f32 to vector<8x256xf32>
    %8 = arith.maximumf %6, %7 : vector<8x256xf32>
    %9 = arith.truncf %8 : vector<8x256xf32> to vector<8x256xbf16>
    %c0_6 = arith.constant 0 : index
    %c0_7 = arith.constant 0 : index
    %10 = vector.load %arg4[%c0_6, %c0_7] : memref<256x256xbf16, #tpu.memory_space<vmem>>, vector<256x256xbf16>
    %cst_8 = arith.constant dense<0.000000e+00> : vector<8x256xf32>
    %11 = tpu.matmul %9, %10, %cst_8 {dimension_numbers = #tpu.dot_dimension_numbers<[1], [0], [0], [1], [0, 0, 1, 1], [], []>} : vector<8x256xbf16>, vector<256x256xbf16>, vector<8x256xf32> -> vector<8x256xf32>
    %c0_9 = arith.constant 0 : index
    %c0_10 = arith.constant 0 : index
    %12 = vector.load %arg5[%c0_9, %c0_10] : memref<1x256xf32, #tpu.memory_space<vmem>>, vector<1x256xf32>
    %13 = vector.broadcast %12 : vector<1x256xf32> to vector<8x256xf32>
    %14 = arith.addf %11, %13 : vector<8x256xf32>
    %cst_11 = arith.constant 0.000000e+00 : f32
    %15 = vector.broadcast %cst_11 : f32 to vector<8x256xf32>
    %16 = arith.maximumf %14, %15 : vector<8x256xf32>
    %17 = arith.truncf %16 : vector<8x256xf32> to vector<8x256xbf16>
    %c0_12 = arith.constant 0 : index
    %c0_13 = arith.constant 0 : index
    %18 = vector.load %arg6[%c0_12, %c0_13] : memref<256x256xbf16, #tpu.memory_space<vmem>>, vector<256x256xbf16>
    %cst_14 = arith.constant dense<0.000000e+00> : vector<8x256xf32>
    %19 = tpu.matmul %17, %18, %cst_14 {dimension_numbers = #tpu.dot_dimension_numbers<[1], [0], [0], [1], [0, 0, 1, 1], [], []>} : vector<8x256xbf16>, vector<256x256xbf16>, vector<8x256xf32> -> vector<8x256xf32>
    %c0_15 = arith.constant 0 : index
    %c0_16 = arith.constant 0 : index
    %20 = vector.load %arg7[%c0_15, %c0_16] : memref<1x256xf32, #tpu.memory_space<vmem>>, vector<1x256xf32>
    %21 = vector.broadcast %20 : vector<1x256xf32> to vector<8x256xf32>
    %22 = arith.addf %19, %21 : vector<8x256xf32>
    %cst_17 = arith.constant 0.000000e+00 : f32
    %23 = vector.broadcast %cst_17 : f32 to vector<8x256xf32>
    %24 = arith.maximumf %22, %23 : vector<8x256xf32>
    %c0_18 = arith.constant 0 : index
    %c0_19 = arith.constant 0 : index
    %25 = vector.load %arg8[%c0_18, %c0_19] : memref<1x256xbf16, #tpu.memory_space<vmem>>, vector<1x256xbf16>
    %26 = arith.truncf %24 : vector<8x256xf32> to vector<8x256xbf16>
    "tpu.trace_start"() <{level = 10 : i32, message = "od,bd->ob"}> : () -> ()
    %cst_20 = arith.constant dense<0.000000e+00> : vector<1x8xf32>
    %27 = tpu.matmul %25, %26, %cst_20 {dimension_numbers = #tpu.dot_dimension_numbers<[1], [1], [0], [0], [0, 0, 1, 0], [], []>} : vector<1x256xbf16>, vector<8x256xbf16>, vector<1x8xf32> -> vector<1x8xf32>
    "tpu.trace_stop"() : () -> ()
    %c0_21 = arith.constant 0 : index
    %28 = memref.load %arg9[%c0_21] : memref<1xf32, #tpu.memory_space<smem>>
    %29 = vector.broadcast %28 : f32 to vector<1x8xf32>
    %30 = arith.addf %27, %29 : vector<1x8xf32>
    %31 = math.tanh %30 : vector<1x8xf32>
    %cst_22 = arith.constant 2.000000e+00 : f32
    %32 = vector.broadcast %cst_22 : f32 to vector<1x8xf32>
    %33 = arith.mulf %32, %31 : vector<1x8xf32>
    %c0_23 = arith.constant 0 : index
    %c0_24 = arith.constant 0 : index
    %c0_25 = arith.constant 0 : index
    %34 = vector.load %arg10[%c0_23, %c0_24, %c0_25] : memref<1x1x8xf32, #tpu.memory_space<vmem>>, vector<1x1x8xf32>
    %35 = vector.shape_cast %34 : vector<1x1x8xf32> to vector<1x8xf32>
    %36 = vector.shape_cast %33 : vector<1x8xf32> to vector<1x1x8xf32>
    tpu.vector_store %arg10[%c0_23, %c0_24, %c0_25], %36 {strides = array<i32>} : memref<1x1x8xf32, #tpu.memory_space<vmem>>, vector<1x1x8xf32>,
    return
  }
  func.func @transform_0(%arg0: i32) -> (i32, i32) {
    %c0_i32 = arith.constant 0 : i32
    %c0_i32_0 = arith.constant 0 : i32
    return %arg0, %c0_i32 : i32, i32
  }
  func.func @transform_1(%arg0: i32) -> (i32, i32) {
    %c0_i32 = arith.constant 0 : i32
    %c0_i32_0 = arith.constant 0 : i32
    %c0_i32_1 = arith.constant 0 : i32
    return %c0_i32, %c0_i32_0 : i32, i32
  }
  func.func @transform_2(%arg0: i32) -> (i32, i32) {
    %c0_i32 = arith.constant 0 : i32
    %c0_i32_0 = arith.constant 0 : i32
    %c0_i32_1 = arith.constant 0 : i32
    return %c0_i32, %c0_i32_0 : i32, i32
  }
  func.func @transform_3(%arg0: i32) -> (i32, i32) {
    %c0_i32 = arith.constant 0 : i32
    %c0_i32_0 = arith.constant 0 : i32
    %c0_i32_1 = arith.constant 0 : i32
    return %c0_i32, %c0_i32_0 : i32, i32
  }
  func.func @transform_4(%arg0: i32) -> (i32, i32) {
    %c0_i32 = arith.constant 0 : i32
    %c0_i32_0 = arith.constant 0 : i32
    %c0_i32_1 = arith.constant 0 : i32
    return %c0_i32, %c0_i32_0 : i32, i32
  }
  func.func @transform_5(%arg0: i32) -> (i32, i32) {
    %c0_i32 = arith.constant 0 : i32
    %c0_i32_0 = arith.constant 0 : i32
    %c0_i32_1 = arith.constant 0 : i32
    return %c0_i32, %c0_i32_0 : i32, i32
  }
  func.func @transform_6(%arg0: i32) -> (i32, i32) {
    %c0_i32 = arith.constant 0 : i32
    %c0_i32_0 = arith.constant 0 : i32
    %c0_i32_1 = arith.constant 0 : i32
    return %c0_i32, %c0_i32_0 : i32, i32
  }
  func.func @transform_7(%arg0: i32) -> (i32, i32) {
    %c0_i32 = arith.constant 0 : i32
    %c0_i32_0 = arith.constant 0 : i32
    %c0_i32_1 = arith.constant 0 : i32
    return %c0_i32, %c0_i32_0 : i32, i32
  }
  func.func @transform_8(%arg0: i32) -> i32 {
    %c0_i32 = arith.constant 0 : i32
    %c0_i32_0 = arith.constant 0 : i32
    return %c0_i32 : i32
  }
  func.func @transform_9(%arg0: i32) -> (i32, i32, i32) {
    %c0_i32 = arith.constant 0 : i32
    %c0_i32_0 = arith.constant 0 : i32
    %c0_i32_1 = arith.constant 0 : i32
    return %arg0, %c0_i32, %c0_i32_0 : i32, i32, i32
  }
}

</mosaic_0001>

<bundles_post_ra>
// kernel: tpu_custom_call.1
= control target key start
LH: loop header
LB: loop body
LE: loop exit
PB: predicated region body
PF: predicated region fallthrough
CT: control target
= control target key end

     0   :  { %15 = vsyncpa [#allocation4], 0  ;;  %s1189_s0 = inlined_call_operand.hbm [shape: f32[8,16], index: 0, kind: input, shape index: {}]   ;;  %s1190_s1 = inlined_call_operand.hbm [shape: bf16[16,256], index: 1, kind: input, shape index: {}]   ;;  %s1191_s2 = inlined_call_operand.vmem [shape: f32[1,256], index: 2, kind: input, shape index: {}]   ;;  %s1192_s3 = inlined_call_operand.hbm [shape: bf16[256,256], index: 3, kind: input, shape index: {}]   ;;  %s1193_s4 = inlined_call_operand.vmem [shape: f32[1,256], index: 4, kind: input, shape index: {}]   ;;  %s1194_s5 = inlined_call_operand.hbm [shape: bf16[256,256], index: 5, kind: input, shape index: {}]   ;;  %s1195_s6 = inlined_call_operand.vmem [shape: f32[1,256], index: 6, kind: input, shape index: {}]   ;;  %s1196_s7 = inlined_call_operand.vmem [shape: bf16[1,256], index: 7, kind: input, shape index: {}]   ;;  %s1197_s8 = inlined_call_operand.<no memory space> [shape: f32[1], index: 8, kind: input, shape index: {}]   ;;  %s1198_s9 = inlined_call_operand.hbm [shape: f32[1,1,8], index: 9, kind: output, shape index: {}]  }
   0x1   :  { %16 = vsyncpa [#allocation7], 0 }
   0x2   :  { %17 = vsyncpa [#allocation10], 0 }
   0x3   :  { %18 = vsyncpa [#allocation5], 0  ;;  %s1046_s30 = smov [#allocation6]   ;;  %s928_s13 = scalar_lea.hbm %s1190_s1, 256 }
   0x4   :  { %s34_s10 = sshll.u32 %s1046_s30, 4  ;;  %p929_p0 = scmp.ne.s32.totalorder %s1190_s1, %s928_s13  ;;  %s35_s10 = int_to_ptr.vmem [resolvable:$true] %s34_s10 }
   0x5   :  { %p932_p1 = scmp.lt.u32.totalorder %s928_s13, %s1190_s1 }
   0x7   :  { %p934_p2 = pnand %p932_p1, %p929_p0 }
   0x9   :  { %937 = shalt.err (!%p934_p2)
}
   0xa   :  { %s938_s18 = scalar_lea.vmem %s35_s10, 256  ;;  %p943_p4 = scmp.lt.s32.totalorder %s35_s10, %s35_s10 }
   0xb   :  { %p939_p3 = scmp.ne.s32.totalorder %s35_s10, %s938_s18  ;;  %p944_p5 = scmp.lt.s32.totalorder %s938_s18, %s938_s18 }
   0xd   :  { %p945_p6 = por %p944_p5, %p943_p4 }
   0xf   :  { %p946_p7 = pnand %p945_p6, %p939_p3 }
  0x11   :  { %949 = shalt.err (!%p946_p7)
}
  0x12   :  { %s1047_s19 = smov 128   ;;  %s1048_s20 = smov 8  }
  0x13   :  { %40 = dma.hbm_to_vmem [thread:$0]  %s1190_s1, 256, %s35_s10, [#allocation7], %s1047_s19, %s1047_s19, %s1048_s20  }
  0x14   :  { %s1049_s23 = smov [#allocation3]   ;;  %s1050_s25 = smov [#allocation8]  }
  0x15   :  { %s25_s24 = sshll.u32 %s1049_s23, 4  ;;  %s48_s26 = sshll.u32 %s1050_s25, 4  ;;  %s26_s24 = int_to_ptr.vmem [resolvable:$true] %s25_s24  ;;  %s49_s26 = int_to_ptr.vmem [resolvable:$true] %s48_s26 }
  0x16   :  { %s950_s29 = scalar_lea.hbm %s1189_s0, 128 }
  0x17   :  { %p951_p8 = scmp.ne.s32.totalorder %s1189_s0, %s950_s29  ;;  %p954_p9 = scmp.lt.u32.totalorder %s950_s29, %s1189_s0 }
  0x19   :  { %p956_p10 = pnand %p954_p9, %p951_p8 }
  0x1b   :  { %959 = shalt.err (!%p956_p10)
}
  0x1c   :  { %s960_s1 = scalar_lea.vmem %s26_s24, 128  ;;  %p965_p12 = scmp.lt.s32.totalorder %s26_s24, %s26_s24 }
  0x1d   :  { %p961_p11 = scmp.ne.s32.totalorder %s26_s24, %s960_s1  ;;  %p966_p13 = scmp.lt.s32.totalorder %s960_s1, %s960_s1 }
  0x1f   :  { %p967_p0 = por %p966_p13, %p965_p12 }
  0x21   :  { %p968_p1 = pnand %p967_p0, %p961_p11 }
  0x23   :  { %971 = shalt.err (!%p968_p1)
}
  0x24   :  { %28 = dma.hbm_to_vmem [thread:$0]  %s1189_s0, 128, %s26_s24, [#allocation4]  }
  0x25   :  { %s972_s17 = scalar_lea.hbm %s1192_s3, 4096 }
  0x26   :  { %p973_p2 = scmp.ne.s32.totalorder %s1192_s3, %s972_s17  ;;  %p976_p3 = scmp.lt.u32.totalorder %s972_s17, %s1192_s3 }
  0x28   :  { %p978_p4 = pnand %p976_p3, %p973_p2 }
  0x2a   :  { %981 = shalt.err (!%p978_p4)
}
  0x2b   :  { %s982_s25 = scalar_lea.vmem %s49_s26, 4096  ;;  %p987_p6 = scmp.lt.s32.totalorder %s49_s26, %s49_s26 }
  0x2c   :  { %p983_p5 = scmp.ne.s32.totalorder %s49_s26, %s982_s25  ;;  %p988_p7 = scmp.lt.s32.totalorder %s982_s25, %s982_s25 }
  0x2e   :  { %p989_p8 = por %p988_p7, %p987_p6 }
  0x30   :  { %p990_p9 = pnand %p989_p8, %p983_p5 }
  0x32   :  { %993 = shalt.err (!%p990_p9)
}
  0x33   :  { %54 = dma.hbm_to_vmem [thread:$0]  %s1192_s3, 4096, %s49_s26, [#allocation7], %s1047_s19, %s1047_s19, %s1048_s20  }
  0x34   :  { %s1051_s27 = smov [#allocation9]   ;;  %s994_s11 = scalar_lea.hbm %s1194_s5, 4096 }
  0x35   :  { %s62_s28 = sshll.u32 %s1051_s27, 4  ;;  %p995_p10 = scmp.ne.s32.totalorder %s1194_s5, %s994_s11  ;;  %s63_s28 = int_to_ptr.vmem [resolvable:$true] %s62_s28 }
  0x36   :  { %p998_p11 = scmp.lt.u32.totalorder %s994_s11, %s1194_s5 }
  0x38   :  { %p1000_p12 = pnand %p998_p11, %p995_p10 }
  0x3a   :  { %1003 = shalt.err (!%p1000_p12)
}
  0x3b   :  { %s1004_s14 = scalar_lea.vmem %s63_s28, 4096  ;;  %p1009_p0 = scmp.lt.s32.totalorder %s63_s28, %s63_s28 }
  0x3c   :  { %p1005_p13 = scmp.ne.s32.totalorder %s63_s28, %s1004_s14  ;;  %p1010_p1 = scmp.lt.s32.totalorder %s1004_s14, %s1004_s14 }
  0x3e   :  { %p1011_p2 = por %p1010_p1, %p1009_p0 }
  0x40   :  { %p1012_p3 = pnand %p1011_p2, %p1005_p13 }
  0x42   :  { %1015 = shalt.err (!%p1012_p3)
}
  0x43   :  { %68 = dma.hbm_to_vmem [thread:$0]  %s1194_s5, 4096, %s63_s28, [#allocation10], %s1047_s19, %s1047_s19, %s1048_s20  }
  0x44   :  { %1038 = dma.done.wait [#allocation4], 128  }
  0x45   :  { %1039 = vsyncadd [#allocation4], 4294967168 }
  0x46   :  { %1040 = dma.done.wait [#allocation7], 4352  }
  0x47   :  { %1041 = vsyncadd [#allocation7], 4294962944 }
  0x48   :  { %1042 = dma.done.wait [#allocation10], 4096  }
  0x49   :  { %1043 = vsyncadd [#allocation10], 4294963200  ;;  %v1052_v0 = vmov 0   ;;  %v827_v1 = vld [vmem:[#allocation6 + $0x4] ss:$8 sps:$4 sm:$0xff]   ;;  %v88_v3 = vld [vmem:[#allocation3] sm:$0xff] }
  0x4a   :  { %150 = vmatprep.mubr.bf16.mxu0 %v1052_v0  ;;  %v829_v2 = vld [vmem:[#allocation6] ss:$8 sps:$4 sm:$0xff]   ;;  %118 = vmatprep.subr.bf16.mxu0 %v827_v1  ;;  %v89_v4 = vpack.c.bf16 %v88_v3, %v88_v3  ;;  %v830_v5 = vld [vmem:[#allocation8 + $0x4] ss:$8 sps:$4 sm:$0xff]   ;;  %v832_v6 = vld [vmem:[#allocation8] ss:$8 sps:$4 sm:$0xff]   ;;  %v94_v1 = vlaneseq }
  0x4b   :  { %119 = vmatpush1.bf16.msra.mxu0 %v829_v2  ;;  %vm114_vm0 = vcmask 130048   ;;  %v833_v7 = vld [vmem:[#allocation8 + $0x14] ss:$8 sps:$4 sm:$0xff]   ;;  %367 = vmatprep.subr.bf16.mxu1 %v830_v5  ;;  %v835_v8 = vld [vmem:[#allocation8 + $0x10] ss:$8 sps:$4 sm:$0xff]   ;;  %vm731_vm1 = vcmask 57344  }
  0x4c   :  { %368 = vmatpush1.bf16.msra.mxu1 %v832_v6  ;;  %v836_v9 = vld [vmem:[#allocation8 + $0x24] ss:$8 sps:$4 sm:$0xff]   ;;  %v838_v10 = vld [vmem:[#allocation8 + $0x20] ss:$8 sps:$4 sm:$0xff]   ;;  %v839_v11 = vld [vmem:[#allocation8 + $0x34] ss:$8 sps:$4 sm:$0xff]  }
  0x4d   :  { %369 = vmatprep.subr.bf16.mxu1 %v833_v7  ;;  %v841_v12 = vld [vmem:[#allocation8 + $0x30] ss:$8 sps:$4 sm:$0xff]   ;;  %v842_v13 = vld [vmem:[#allocation8 + $0x44] ss:$8 sps:$4 sm:$0xff]   ;;  %v844_v14 = vld [vmem:[#allocation8 + $0x40] ss:$8 sps:$4 sm:$0xff]  }
  0x4e   :  { %752 = vmatmul.mubr.msk.bf16.vlgmr.msra.gmra.mrb[0].mxu0 %vm114_vm0, %v89_v4  ;;  %v845_v15 = vld [vmem:[#allocation8 + $0x54] ss:$8 sps:$4 sm:$0xff]   ;;  %v847_v16 = vld [vmem:[#allocation8 + $0x50] ss:$8 sps:$4 sm:$0xff]   ;;  %v848_v17 = vld [vmem:[#allocation8 + $0x64] ss:$8 sps:$4 sm:$0xff]  }
  0x4f   :  { %v850_v18 = vld [vmem:[#allocation8 + $0x60] ss:$8 sps:$4 sm:$0xff]   ;;  %v851_v19 = vld [vmem:[#allocation8 + $0x74] ss:$8 sps:$4 sm:$0xff]   ;;  %v853_v20 = vld [vmem:[#allocation8 + $0x70] ss:$8 sps:$4 sm:$0xff]  }
  0x50   :  { %370 = vmatpush1.bf16.msra.mxu1 %v835_v8  ;;  %v854_v21 = vld [vmem:[#allocation8 + $0x84] ss:$8 sps:$4 sm:$0xff]   ;;  %v856_v22 = vld [vmem:[#allocation8 + $0x80] ss:$8 sps:$4 sm:$0xff]   ;;  %v857_v23 = vld [vmem:[#allocation8 + $0x94] ss:$8 sps:$4 sm:$0xff]  }
  0x51   :  { %371 = vmatprep.subr.bf16.mxu1 %v836_v9  ;;  %v859_v24 = vld [vmem:[#allocation8 + $0x90] ss:$8 sps:$4 sm:$0xff]   ;;  %v860_v25 = vld [vmem:[#allocation8 + $0xa4] ss:$8 sps:$4 sm:$0xff]   ;;  %v862_v26 = vld [vmem:[#allocation8 + $0xa0] ss:$8 sps:$4 sm:$0xff]  }
  0x52   :  { %v863_v27 = vld [vmem:[#allocation8 + $0xb4] ss:$8 sps:$4 sm:$0xff]   ;;  %v865_v28 = vld [vmem:[#allocation8 + $0xb0] ss:$8 sps:$4 sm:$0xff]   ;;  %v866_v29 = vld [vmem:[#allocation8 + $0xc4] ss:$8 sps:$4 sm:$0xff]  }
  0x53   :  { %v868_v30 = vld [vmem:[#allocation8 + $0xc0] ss:$8 sps:$4 sm:$0xff]   ;;  %v869_v31 = vld [vmem:[#allocation8 + $0xd4] ss:$8 sps:$4 sm:$0xff]   ;;  %v871_v32 = vld [vmem:[#allocation8 + $0xd0] ss:$8 sps:$4 sm:$0xff]  }
  0x54   :  { %372 = vmatpush1.bf16.msra.mxu1 %v838_v10  ;;  %v872_v33 = vld [vmem:[#allocation8 + $0xe4] ss:$8 sps:$4 sm:$0xff]   ;;  %v874_v34 = vld [vmem:[#allocation8 + $0xe0] ss:$8 sps:$4 sm:$0xff]   ;;  %v875_v35 = vld [vmem:[#allocation8 + $0xf4] ss:$8 sps:$4 sm:$0xff]  }
  0x55   :  { %373 = vmatprep.subr.bf16.mxu1 %v839_v11  ;;  %v877_v36 = vld [vmem:[#allocation8 + $0xf0] ss:$8 sps:$4 sm:$0xff]   ;;  %v878_v37 = vld [vmem:[#allocation9] ss:$8 sps:$4 sm:$0xff]   ;;  %v880_v38 = vld [vmem:[#allocation9 + $0x4] ss:$8 sps:$4 sm:$0xff]  }
  0x56   :  { %v883_v39 = vld [vmem:[#allocation9 + $0x14] ss:$8 sps:$4 sm:$0xff]   ;;  %616 = vmatprep.subr.bf16.mxu0 %v880_v38  ;;  %v881_v40 = vld [vmem:[#allocation9 + $0x10] ss:$8 sps:$4 sm:$0xff]   ;;  %v886_v41 = vld [vmem:[#allocation9 + $0x24] ss:$8 sps:$4 sm:$0xff]  }
  0x57   :  { %617 = vmatpush1.bf16.msra.mxu0 %v878_v37  ;;  %v884_v42 = vld [vmem:[#allocation9 + $0x20] ss:$8 sps:$4 sm:$0xff]   ;;  %v889_v43 = vld [vmem:[#allocation9 + $0x34] ss:$8 sps:$4 sm:$0xff]   ;;  %v887_v44 = vld [vmem:[#allocation9 + $0x30] ss:$8 sps:$4 sm:$0xff]  }
  0x58   :  { %374 = vmatpush1.bf16.msra.mxu1 %v841_v12  ;;  %618 = vmatprep.subr.bf16.mxu0 %v883_v39  ;;  %v892_v45 = vld [vmem:[#allocation9 + $0x44] ss:$8 sps:$4 sm:$0xff]   ;;  %v890_v46 = vld [vmem:[#allocation9 + $0x40] ss:$8 sps:$4 sm:$0xff]   ;;  %v895_v47 = vld [vmem:[#allocation9 + $0x54] ss:$8 sps:$4 sm:$0xff]  }
  0x59   :  { %375 = vmatprep.subr.bf16.mxu1 %v842_v13  ;;  %v893_v48 = vld [vmem:[#allocation9 + $0x50] ss:$8 sps:$4 sm:$0xff]   ;;  %v898_v49 = vld [vmem:[#allocation9 + $0x64] ss:$8 sps:$4 sm:$0xff]   ;;  %v896_v50 = vld [vmem:[#allocation9 + $0x60] ss:$8 sps:$4 sm:$0xff]  }
  0x5a   :  { %v901_v51 = vld [vmem:[#allocation9 + $0x74] ss:$8 sps:$4 sm:$0xff]   ;;  %v899_v52 = vld [vmem:[#allocation9 + $0x70] ss:$8 sps:$4 sm:$0xff]   ;;  %v904_v53 = vld [vmem:[#allocation9 + $0x84] ss:$8 sps:$4 sm:$0xff]  }
  0x5b   :  { %619 = vmatpush1.bf16.msra.mxu0 %v881_v40  ;;  %v902_v54 = vld [vmem:[#allocation9 + $0x80] ss:$8 sps:$4 sm:$0xff]   ;;  %v907_v55 = vld [vmem:[#allocation9 + $0x94] ss:$8 sps:$4 sm:$0xff]   ;;  %v905_v56 = vld [vmem:[#allocation9 + $0x90] ss:$8 sps:$4 sm:$0xff]  }
  0x5c   :  { %376 = vmatpush1.bf16.msra.mxu1 %v844_v14  ;;  %620 = vmatprep.subr.bf16.mxu0 %v886_v41  ;;  %v910_v57 = vld [vmem:[#allocation9 + $0xa4] ss:$8 sps:$4 sm:$0xff]   ;;  %v908_v58 = vld [vmem:[#allocation9 + $0xa0] ss:$8 sps:$4 sm:$0xff]   ;;  %v913_v59 = vld [vmem:[#allocation9 + $0xb4] ss:$8 sps:$4 sm:$0xff]  }
  0x5d   :  { %377 = vmatprep.subr.bf16.mxu1 %v845_v15  ;;  %v911_v60 = vld [vmem:[#allocation9 + $0xb0] ss:$8 sps:$4 sm:$0xff]   ;;  %v916_v61 = vld [vmem:[#allocation9 + $0xc4] ss:$8 sps:$4 sm:$0xff]   ;;  %v914_v62 = vld [vmem:[#allocation9 + $0xc0] ss:$8 sps:$4 sm:$0xff]  }
  0x5e   :  { %v919_v63 = vld [vmem:[#allocation9 + $0xd4] ss:$8 sps:$4 sm:$0xff]   ;;  %v917_v0 = vld [vmem:[#allocation9 + $0xd0] ss:$8 sps:$4 sm:$0xff]   ;;  %v95_v2 = vshrl.u32 %v94_v1, 7 }
  0x5f   :  { %621 = vmatpush1.bf16.msra.mxu0 %v884_v42  ;;  %v92_v4 = vld [vmem:[%s1191_s2] sm:$0x3] }
  0x60   :  { %378 = vmatpush1.bf16.msra.mxu1 %v847_v16  ;;  %622 = vmatprep.subr.bf16.mxu0 %v889_v43  ;;  %v96_v3 = vsub.s32 0, %v95_v2  ;;  %v100_v5 = vsub.s32 1, %v95_v2  ;;  %v817_v37 = vld.sshfl [vmem:[%s1196_s7] sm:$0x11 pattern:$0x75316420] }
  0x61   :  { %379 = vmatprep.subr.bf16.mxu1 %v848_v17  ;;  %v672_v39 = vcombine.high %v817_v37, %v817_v37  ;;  %v444_v43 = vld [vmem:[%s1195_s6] sm:$0x3]  ;;  %s1054_s6 = smov [#allocation11]  }
  0x62   :  { %v97_v6 = vrot.slane %v92_v4, %v96_v3  ;;  %v101_v7 = vrot.slane %v92_v4, %v100_v5  ;;  %s739_s21 = sshll.u32 %s1054_s6, 4  ;;  %s740_s21 = int_to_ptr.vmem [resolvable:$true] %s739_s21 }
  0x63   :  { %623 = vmatpush1.bf16.msra.mxu0 %v887_v44  ;;  %v449_v44 = vrot.slane %v444_v43, %v96_v3  ;;  %s1016_s22 = scalar_lea.vmem %s740_s21, 16  ;;  %s1020_s23 = scalar_lea.vmem %s740_s21, 32 }
  0x64   :  { %380 = vmatpush1.bf16.msra.mxu1 %v850_v18  ;;  %624 = vmatprep.subr.bf16.mxu0 %v892_v45  ;;  %v922_v18 = vld [vmem:[#allocation9 + $0xe4] ss:$8 sps:$4 sm:$0xff]   ;;  %v453_v45 = vrot.slane %v444_v43, %v100_v5  ;;  %p1017_p4 = scmp.ne.s32.totalorder %s740_s21, %s1016_s22  ;;  %p1021_p5 = scmp.lt.s32.totalorder %s740_s21, %s740_s21 }
  0x65   :  { %381 = vmatprep.subr.bf16.mxu1 %v851_v19  ;;  %v920_v19 = vld [vmem:[#allocation9 + $0xe0] ss:$8 sps:$4 sm:$0xff]   ;;  %p1022_p6 = scmp.lt.s32.totalorder %s1020_s23, %s1016_s22 }
  0x67   :  { %625 = vmatpush1.bf16.msra.mxu0 %v890_v46  ;;  %p1023_p7 = por %p1022_p6, %p1021_p5 }
  0x68   :  { %382 = vmatpush1.bf16.msra.mxu1 %v853_v20  ;;  %626 = vmatprep.subr.bf16.mxu0 %v895_v47  ;;  %v925_v20 = vld [vmem:[#allocation9 + $0xf4] ss:$8 sps:$4 sm:$0xff]  }
  0x69   :  { %383 = vmatprep.subr.bf16.mxu1 %v854_v21  ;;  %v923_v21 = vld [vmem:[#allocation9 + $0xf0] ss:$8 sps:$4 sm:$0xff]   ;;  %p1024_p8 = pnand %p1023_p7, %p1017_p4 }
  0x6b   :  { %627 = vmatpush1.bf16.msra.mxu0 %v893_v48 }
  0x6c   :  { %384 = vmatpush1.bf16.msra.mxu1 %v856_v22  ;;  %628 = vmatprep.subr.bf16.mxu0 %v898_v49  ;;  %v195_v22 = vld [vmem:[%s1193_s4] sm:$0x3] }
  0x6d   :  { %385 = vmatprep.subr.bf16.mxu1 %v857_v23  ;;  %v200_v23 = vrot.slane %v195_v22, %v96_v3 }
  0x6f   :  { %629 = vmatpush1.bf16.msra.mxu0 %v896_v50 }
  0x70   :  { %386 = vmatpush1.bf16.msra.mxu1 %v859_v24  ;;  %630 = vmatprep.subr.bf16.mxu0 %v901_v51  ;;  %v204_v24 = vrot.slane %v195_v22, %v100_v5 }
  0x71   :  { %387 = vmatprep.subr.bf16.mxu1 %v860_v25 }
  0x73   :  { %631 = vmatpush1.bf16.msra.mxu0 %v899_v52 }
  0x74   :  { %388 = vmatpush1.bf16.msra.mxu1 %v862_v26  ;;  %632 = vmatprep.subr.bf16.mxu0 %v904_v53 }
  0x75   :  { %389 = vmatprep.subr.bf16.mxu1 %v863_v27 }
  0x77   :  { %633 = vmatpush1.bf16.msra.mxu0 %v902_v54 }
  0x78   :  { %390 = vmatpush1.bf16.msra.mxu1 %v865_v28  ;;  %634 = vmatprep.subr.bf16.mxu0 %v907_v55 }
  0x79   :  { %391 = vmatprep.subr.bf16.mxu1 %v866_v29 }
  0x7b   :  { %635 = vmatpush1.bf16.msra.mxu0 %v905_v56  ;;  %v663_v56 = vstv %s1197_s8 }
  0x7c   :  { %392 = vmatpush1.bf16.msra.mxu1 %v868_v30  ;;  %636 = vmatprep.subr.bf16.mxu0 %v910_v57 }
  0x7d   :  { %393 = vmatprep.subr.bf16.mxu1 %v869_v31 }
  0x7f   :  { %637 = vmatpush1.bf16.msra.mxu0 %v908_v58 }
  0x80   :  { %394 = vmatpush1.bf16.msra.mxu1 %v871_v32  ;;  %638 = vmatprep.subr.bf16.mxu0 %v913_v59 }
  0x81   :  { %395 = vmatprep.subr.bf16.mxu1 %v872_v33 }
  0x83   :  { %639 = vmatpush1.bf16.msra.mxu0 %v911_v60 }
  0x84   :  { %396 = vmatpush1.bf16.msra.mxu1 %v874_v34  ;;  %640 = vmatprep.subr.bf16.mxu0 %v916_v61 }
  0x85   :  { %397 = vmatprep.subr.bf16.mxu1 %v875_v35  ;;  %v1053_v35 = vmov 1966171168  }
  0x87   :  { %641 = vmatpush1.bf16.msra.mxu0 %v914_v62 }
  0x88   :  { %398 = vmatpush1.bf16.msra.mxu1 %v877_v36  ;;  %642 = vmatprep.subr.bf16.mxu0 %v919_v63  ;;  %v674_v36 = vunpack.c.l.s4 %v1053_v35 }
  0x8a   :  { %v675_v38 = vunpack.c.0.s8 %v674_v36 }
  0x8b   :  { %643 = vmatpush1.bf16.msra.mxu0 %v917_v0 }
  0x8c   :  { %644 = vmatprep.subr.bf16.mxu0 %v922_v18  ;;  %v678_v40 = vsub.s32 %v675_v38, %v95_v2 }
  0x8e   :  { %v686_v41 = vrot.slane %v672_v39, %v678_v40  ;;  %v679_v42 = vrot.slane %v817_v37, %v678_v40 }
  0x8f   :  { %645 = vmatpush1.bf16.msra.mxu0 %v920_v19 }
  0x90   :  { %646 = vmatprep.subr.bf16.mxu0 %v925_v20 }
  0x93   :  { %647 = vmatpush1.bf16.msra.mxu0 %v923_v21 }
 0x121   :  { %v152_v8 = vpop.f32.mrb[0].mxu0 }
 0x122   :  { %v153_v9 = vadd.f32 %v152_v8, %v97_v6  ;;  %v154_v10 = vpop.f32.mrb[1].mxu0 }
 0x123   :  { %v155_v11 = vadd.f32 %v154_v10, %v101_v7  ;;  %v156_v12 = vpop.f32.mrb[2].mxu0 }
 0x124   :  { %v159_v13 = vmax.f32 %v153_v9, 0.0  ;;  %v157_v14 = vpop.f32.mrb[3].mxu0 }
 0x125   :  { %v160_v15 = vmax.f32 %v155_v11, 0.0 }
 0x126   :  { %v161_v17 = vpack.c.bf16 %v159_v13, %v159_v13 }
 0x127   :  { %v162_v16 = vpack.c.bf16 %v160_v15, %v160_v15 }
 0x129   :  { %399 = vmatprep.mubr.bf16.mxu1 %v162_v16 }
 0x12a   :  { %400 = vmatmul.mubr.bf16.vlgmr.msra.gmra.mrb[0].mxu1 %v161_v17 }
 0x12b   :  { %721 = vmatprep.mubr.bf16.mxu1 %v686_v41 }
 0x1fd   :  { %v401_v25 = vpop.f32.mrb[0].mxu1 }
 0x1fe   :  { %v402_v26 = vadd.f32 %v401_v25, %v200_v23  ;;  %v403_v27 = vpop.f32.mrb[1].mxu1 }
 0x1ff   :  { %v404_v28 = vadd.f32 %v403_v27, %v204_v24  ;;  %v405_v29 = vpop.f32.mrb[2].mxu1 }
 0x200   :  { %v408_v30 = vmax.f32 %v402_v26, 0.0  ;;  %v406_v31 = vpop.f32.mrb[3].mxu1 }
 0x201   :  { %v409_v32 = vmax.f32 %v404_v28, 0.0 }
 0x202   :  { %v410_v34 = vpack.c.bf16 %v408_v30, %v408_v30 }
 0x203   :  { %v411_v33 = vpack.c.bf16 %v409_v32, %v409_v32 }
 0x205   :  { %648 = vmatprep.mubr.bf16.mxu0 %v411_v33 }
 0x206   :  { %649 = vmatmul.mubr.bf16.vlgmr.msra.gmra.mrb[4].mxu0 %v410_v34 }
 0x2d9   :  { %v650_v46 = vpop.f32.mrb[4].mxu0 }
 0x2da   :  { %v651_v47 = vadd.f32 %v650_v46, %v449_v44  ;;  %v652_v48 = vpop.f32.mrb[5].mxu0 }
 0x2db   :  { %v653_v49 = vadd.f32 %v652_v48, %v453_v45  ;;  %v654_v50 = vpop.f32.mrb[6].mxu0 }
 0x2dc   :  { %v657_v51 = vmax.f32 %v651_v47, 0.0  ;;  %v655_v52 = vpop.f32.mrb[7].mxu0 }
 0x2dd   :  { %v658_v53 = vmax.f32 %v653_v49, 0.0 }
 0x2de   :  { %v660_v55 = vpack.c.bf16 %v657_v51, %v657_v51 }
 0x2df   :  { %v661_v54 = vpack.c.bf16 %v658_v53, %v658_v53 }
 0x2e1   :  { %689 = vmatprep.subr.bf16.mxu1 %v661_v54 }
 0x2e2   :  { %690 = vmatpush1.bf16.xpose.msra.mxu1 %v660_v55 }
 0x2e9   :  { %722 = vmatmul.mubr.bf16.vlgmr.msra.gmra.mrb[4].mxu1 %v679_v42 }
 0x3bc   :  { %v723_v57 = vpop.f32.mrb[4].mxu1 }
 0x3bd   :  { %v724_v58 = vadd.f32 %v723_v57, %v663_v56  ;;  %v725_v59 = vpop.f32.mrb[5].mxu1 }
 0x3be   :  { %v726_v60 = vpop.f32.mrb[6].mxu1 }
 0x3bf   :  { %926 = vtanh.f32 %v724_v58  ;;  %v727_v61 = vpop.f32.mrb[7].mxu1 }
 0x3c9   :  { %v927_v62 = vpop.eup %926 }
 0x3ca   :  { %v730_v63 = vmul.f32 2.0, %v927_v62 }
 0x3cc   :  { %732 = vst.msk [vmem:[#allocation11] sm:$0x1] %vm731_vm1, %v730_v63 }
 0x3cd   :  { %1027 = shalt.err (!%p1024_p8)
}
 0x3ce   :  { %s1028_s0 = scalar_lea.hbm %s1198_s9, 16 }
 0x3cf   :  { %p1029_p9 = scmp.ne.s32.totalorder %s1198_s9, %s1028_s0  ;;  %p1032_p10 = scmp.lt.u32.totalorder %s1028_s0, %s1198_s9 }
 0x3d1   :  { %p1034_p11 = pnand %p1032_p10, %p1029_p9 }
 0x3d3   :  { %1037 = shalt.err (!%p1034_p11)
}
 0x3d4   :  { %742 = dma.vmem_to_hbm [thread:$0]  %s740_s21, 16, %s1198_s9, [#allocation5]  }
 0x3d5   :  { %1044 = dma.done.wait [#allocation5], 16  }
 0x3d6   :  { %1045 = vsyncadd [#allocation5], 4294967280 }
 0x3d7   :  { %746 = vsyncpa [#allocation4], 1 }
 0x3d8   :  { %747 = vsyncpa [#allocation7], 1 }
 0x3d9   :  { %748 = vsyncpa [#allocation10], 1 }
 0x3da   :  { %749 = vsyncpa [#allocation5], 1 }

</bundles_post_ra>
